<compile_context>
chip_gen: v7x
topology: tpu7x:2x2x1
jax: 0.10.0
libtpu: 0.0.40
codegen_flags: <defaults>
</compile_context>

<pallas_src>
import jax
import jax.numpy as jnp
from jax.experimental import pallas as pl
from jax.experimental.pallas import tpu as pltpu


def _graph_conv_kernel(x_ref, b_ref, bias_ref, o_ref):
    # x_ref    : (tm, V*Cin)
    # b_ref    : (V*Cin, Cout*W)   fused conv⊗graph operator (resident in VMEM)
    # bias_ref : (1, Cout*W)       fused bias
    # o_ref    : (tm, Cout*W)      lane-dense output tile
    y = jnp.dot(x_ref[...], b_ref[...], preferred_element_type=jnp.float32)
    o_ref[...] = (y + bias_ref[...]).astype(o_ref.dtype)


def graph_conv(x, A, weight, bias, *, s_kernel_size, tm=256, compute_dtype=None):
    """x: (N, C_in, T, V) NCHW; A: (>=K, V, V); weight: (K*C_out, C_in); bias: (K*C_out,).

    tm: rows of N*T per grid step (ragged sizes handled by zero-padding).
    compute_dtype: optionally jnp.bfloat16 on v6e/v7x for 2x MXU throughput and
    half the HBM bytes on the x stream (accumulation stays f32); default f32.
    """
    N, Cin, T, V = x.shape
    K = s_kernel_size
    KC = weight.shape[0]
    assert KC % K == 0, "weight.shape[0] must be divisible by s_kernel_size"
    Cout = KC // K
    Wn = A.shape[2]
    assert A.shape[1] == V

    M = N * T
    VCin = V * Cin
    CW = Cout * Wn

    # ---- wrapper-side (one-time, tiny) precompute of the fused operator ----
    w_k = weight.reshape(K, Cout, Cin)                       # (K, Cout, Cin)
    a_k = A[:K]                                              # (K, V, Wn)
    # B[(v,ci),(c,w)] = sum_k W_k[c,ci] * A_k[v,w]
    B_op = jnp.einsum('kci,kvw->vicw', w_k, a_k).reshape(VCin, CW)
    # b_eff[(c,w)] = sum_k b_k[c] * sum_v A_k[v,w]
    b_k = bias.reshape(K, Cout)
    b_eff = jnp.einsum('kc,kw->cw', b_k, a_k.sum(axis=1)).reshape(1, CW)
    b_eff = b_eff.astype(jnp.float32)

    # x channels-last, flattened so the lane dimension is V*Cin (not Cin=4).
    # TODO(synk): if the surrounding model can supply/consume channels-last
    # activations, these wrapper transposes (full HBM passes) can be dropped.
    x_flat = jnp.transpose(x, (0, 2, 3, 1)).reshape(M, VCin)

    if compute_dtype is not None:
        x_flat = x_flat.astype(compute_dtype)
        B_op = B_op.astype(compute_dtype)

    # ---- tiling: large lane-dense row tiles, pad ragged N*T ----
    tm = max(8, min(int(tm), pl.cdiv(M, 8) * 8))
    tm = (tm // 8) * 8                       # sublane-aligned
    M_pad = pl.cdiv(M, tm) * tm
    if M_pad != M:
        x_flat = jnp.pad(x_flat, ((0, M_pad - M), (0, 0)))
    grid_m = M_pad // tm

    out_flat = pl.pallas_call(
        _graph_conv_kernel,
        out_shape=jax.ShapeDtypeStruct((M_pad, CW), x.dtype),
        grid_spec=pltpu.PrefetchScalarGridSpec(
            num_scalar_prefetch=0,
            grid=(grid_m,),
            in_specs=[
                pl.BlockSpec((tm, VCin), lambda i: (i, 0)),   # x row tile
                pl.BlockSpec((VCin, CW), lambda i: (0, 0)),   # fused operator (resident)
                pl.BlockSpec((1, CW), lambda i: (0, 0)),      # fused bias (resident)
            ],
            out_specs=pl.BlockSpec((tm, CW), lambda i: (i, 0)),
        ),
        compiler_params=pltpu.CompilerParams(
            dimension_semantics=("parallel",),                # megacore-shardable on v7x
            vmem_limit_bytes=64 << 20,
        ),
    )(x_flat, B_op, b_eff)

    # Back to PyTorch output layout (N, C_out, T, W).
    out = out_flat[:M].reshape(N, T, Cout, Wn)
    return jnp.transpose(out, (0, 2, 1, 3))


def graph_conv_ref(x, A, weight, bias, s_kernel_size):
    """Pure-JAX reference mirroring the PyTorch forward."""
    K = s_kernel_size
    N, Cin, T, V = x.shape
    Cout = weight.shape[0] // K
    y = jnp.einsum('oc,nctv->notv', weight, x) + bias[None, :, None, None]
    y = y.reshape(N, K, Cout, T, V)
    return jnp.einsum('nkctv,kvw->nctw', y, A[:K])


if __name__ == "__main__":
    key = jax.random.PRNGKey(0)
    k1, k2, k3, k4 = jax.random.split(key, 4)

    # Small shapes consistent with the module: N, C_in, T(frames), V(graph nodes).
    N, Cin, T, V = 2, 4, 16, 16
    Cout, max_graph_distance = 8, 2
    K = max_graph_distance + 1  # s_kernel_size

    x = jax.random.normal(k1, (N, Cin, T, V), jnp.float32)
    A = jax.random.normal(k2, (K, V, V), jnp.float32)
    # Deterministic synthetic parameters (Conv2d 1x1 weight squeezed to 2D, plus bias).
    weight = 0.1 * jax.random.normal(k3, (K * Cout, Cin), jnp.float32)
    bias = 0.1 * jax.random.normal(k4, (K * Cout,), jnp.float32)

    out = graph_conv(x, A, weight, bias, s_kernel_size=K)
    out = jax.block_until_ready(out)

    ref = graph_conv_ref(x, A, weight, bias, K)
    assert out.shape == (N, Cout, T, V)
    assert jnp.allclose(out, ref, atol=1e-4, rtol=1e-4)
    print("KERNEL_OK")
</pallas_src>

<mosaic_0001>
module attributes {stable_mosaic.version = 11 : i64} {
  func.func @_graph_conv_kernel(%arg0: i32, %arg1: memref<32x64xf32, #tpu.memory_space<vmem>>, %arg2: memref<64x128xf32, #tpu.memory_space<vmem>>, %arg3: memref<1x128xf32, #tpu.memory_space<vmem>>, %arg4: memref<32x128xf32, #tpu.memory_space<vmem>>) attributes {dimension_semantics = [#tpu.dimension_semantics<parallel>], iteration_bounds = array<i64: 1>, scalar_prefetch = 0 : i64, scratch_operands = 0 : i64, tpu.core_type = #tpu.core_type<tc>, window_params = [{transform_indices = @transform_0, window_bounds = array<i64: 32, 64>}, {pipeline_mode = #tpu.pipeline_mode<synchronous>, transform_indices = @transform_1, window_bounds = array<i64: 64, 128>}, {pipeline_mode = #tpu.pipeline_mode<synchronous>, transform_indices = @transform_2, window_bounds = array<i64: 1, 128>}, {transform_indices = @transform_3, window_bounds = array<i64: 32, 128>}]} {
    %c0 = arith.constant 0 : index
    %c0_0 = arith.constant 0 : index
    %0 = vector.load %arg1[%c0, %c0_0] : memref<32x64xf32, #tpu.memory_space<vmem>>, vector<32x64xf32>
    %c0_1 = arith.constant 0 : index
    %c0_2 = arith.constant 0 : index
    %1 = vector.load %arg2[%c0_1, %c0_2] : memref<64x128xf32, #tpu.memory_space<vmem>>, vector<64x128xf32>
    %cst = arith.constant dense<0.000000e+00> : vector<32x128xf32>
    %2 = tpu.matmul %0, %1, %cst {dimension_numbers = #tpu.dot_dimension_numbers<[1], [0], [0], [1], [0, 0, 1, 1], [], []>} : vector<32x64xf32>, vector<64x128xf32>, vector<32x128xf32> -> vector<32x128xf32>
    %c0_3 = arith.constant 0 : index
    %c0_4 = arith.constant 0 : index
    %3 = vector.load %arg3[%c0_3, %c0_4] : memref<1x128xf32, #tpu.memory_space<vmem>>, vector<1x128xf32>
    %4 = vector.broadcast %3 : vector<1x128xf32> to vector<32x128xf32>
    %5 = arith.addf %2, %4 : vector<32x128xf32>
    %c0_5 = arith.constant 0 : index
    %c0_6 = arith.constant 0 : index
    %6 = vector.load %arg4[%c0_5, %c0_6] : memref<32x128xf32, #tpu.memory_space<vmem>>, vector<32x128xf32>
    tpu.vector_store %arg4[%c0_5, %c0_6], %5 {strides = array<i32>} : memref<32x128xf32, #tpu.memory_space<vmem>>, vector<32x128xf32>,
    return
  }
  func.func @transform_0(%arg0: i32) -> (i32, i32) {
    %c0_i32 = arith.constant 0 : i32
    %c0_i32_0 = arith.constant 0 : i32
    return %arg0, %c0_i32 : i32, i32
  }
  func.func @transform_1(%arg0: i32) -> (i32, i32) {
    %c0_i32 = arith.constant 0 : i32
    %c0_i32_0 = arith.constant 0 : i32
    %c0_i32_1 = arith.constant 0 : i32
    return %c0_i32, %c0_i32_0 : i32, i32
  }
  func.func @transform_2(%arg0: i32) -> (i32, i32) {
    %c0_i32 = arith.constant 0 : i32
    %c0_i32_0 = arith.constant 0 : i32
    %c0_i32_1 = arith.constant 0 : i32
    return %c0_i32, %c0_i32_0 : i32, i32
  }
  func.func @transform_3(%arg0: i32) -> (i32, i32) {
    %c0_i32 = arith.constant 0 : i32
    %c0_i32_0 = arith.constant 0 : i32
    return %arg0, %c0_i32 : i32, i32
  }
}

</mosaic_0001>

<bundles_post_ra>
// kernel: tpu_custom_call.1
= control target key start
LH: loop header
LB: loop body
LE: loop exit
PB: predicated region body
PF: predicated region fallthrough
CT: control target
= control target key end

     0   :  { %8 = vsyncpa [#allocation3], 0  ;;  %s450_s0 = inlined_call_operand.hbm [shape: f32[32,64], index: 0, kind: input, shape index: {}]   ;;  %s451_s1 = inlined_call_operand.hbm [shape: f32[64,128], index: 1, kind: input, shape index: {}]   ;;  %s452_s2 = inlined_call_operand.hbm [shape: f32[1,128], index: 2, kind: input, shape index: {}]   ;;  %s453_s3 = inlined_call_operand.hbm [shape: f32[32,128], index: 3, kind: output, shape index: {}]  }
   0x1   :  { %9 = vsyncpa [#allocation6], 0 }
   0x2   :  { %10 = vsyncpa [#allocation4], 0  ;;  %s356_s12 = smov [#allocation5]   ;;  %s357_s14 = smov [#allocation2]  }
   0x3   :  { %s28_s13 = sshll.u32 %s356_s12, 4  ;;  %s16_s15 = sshll.u32 %s357_s14, 4  ;;  %s29_s13 = int_to_ptr.vmem [resolvable:$true] %s28_s13  ;;  %s382_s15 = int_to_ptr.vmem [resolvable:$true] %s16_s15 }
   0x4   :  { %s262_s18 = scalar_lea.hbm %s451_s1, 1024 }
   0x5   :  { %p263_p0 = scmp.ne.s32.totalorder %s451_s1, %s262_s18  ;;  %p266_p1 = scmp.lt.u32.totalorder %s262_s18, %s451_s1 }
   0x7   :  { %p268_p2 = pnand %p266_p1, %p263_p0 }
   0x9   :  { %271 = shalt.err (!%p268_p2)
}
   0xa   :  { %s272_s23 = scalar_lea.vmem %s29_s13, 1024  ;;  %p277_p4 = scmp.lt.s32.totalorder %s29_s13, %s29_s13 }
   0xb   :  { %p273_p3 = scmp.ne.s32.totalorder %s29_s13, %s272_s23  ;;  %p278_p5 = scmp.lt.s32.totalorder %s272_s23, %s272_s23 }
   0xd   :  { %p279_p6 = por %p278_p5, %p277_p4 }
   0xf   :  { %p280_p7 = pnand %p279_p6, %p273_p3 }
  0x11   :  { %283 = shalt.err (!%p280_p7)
}
  0x12   :  { %s358_s24 = smov 128   ;;  %s359_s25 = smov 8  }
  0x13   :  { %34 = dma.hbm_to_vmem [thread:$0]  %s451_s1, 1024, %s29_s13, [#allocation6], %s358_s24, %s358_s24, %s359_s25  }
  0x14   :  { %s284_s30 = scalar_lea.hbm %s450_s0, 512 }
  0x15   :  { %p285_p8 = scmp.ne.s32.totalorder %s450_s0, %s284_s30  ;;  %p288_p9 = scmp.lt.u32.totalorder %s284_s30, %s450_s0 }
  0x17   :  { %p290_p10 = pnand %p288_p9, %p285_p8 }
  0x19   :  { %293 = shalt.err (!%p290_p10)
}
  0x1a   :  { %s294_s8 = scalar_lea.vmem %s382_s15, 512  ;;  %p299_p12 = scmp.lt.s32.totalorder %s382_s15, %s382_s15 }
  0x1b   :  { %p295_p11 = scmp.ne.s32.totalorder %s382_s15, %s294_s8  ;;  %p300_p13 = scmp.lt.s32.totalorder %s294_s8, %s294_s8 }
  0x1d   :  { %p301_p0 = por %p300_p13, %p299_p12 }
  0x1f   :  { %p302_p1 = pnand %p301_p0, %p295_p11 }
  0x21   :  { %305 = shalt.err (!%p302_p1)
}
  0x22   :  { %22 = dma.hbm_to_vmem [thread:$0]  %s450_s0, 512, %s382_s15, [#allocation3], %s358_s24, %s358_s24, %s359_s25  }
  0x23   :  { %s360_s10 = smov [#allocation7]   ;;  %s306_s14 = scalar_lea.hbm %s452_s2, 16 }
  0x24   :  { %s41_s11 = sshll.u32 %s360_s10, 4  ;;  %p307_p2 = scmp.ne.s32.totalorder %s452_s2, %s306_s14  ;;  %s42_s11 = int_to_ptr.vmem [resolvable:$true] %s41_s11 }
  0x25   :  { %p310_p3 = scmp.lt.u32.totalorder %s306_s14, %s452_s2 }
  0x27   :  { %p312_p4 = pnand %p310_p3, %p307_p2 }
  0x29   :  { %315 = shalt.err (!%p312_p4)
}
  0x2a   :  { %s316_s20 = scalar_lea.vmem %s42_s11, 16  ;;  %s320_s0 = scalar_lea.vmem %s42_s11, 32 }
  0x2b   :  { %p317_p5 = scmp.ne.s32.totalorder %s42_s11, %s316_s20  ;;  %p321_p6 = scmp.lt.s32.totalorder %s42_s11, %s42_s11 }
  0x2c   :  { %p322_p7 = scmp.lt.s32.totalorder %s320_s0, %s316_s20 }
  0x2e   :  { %p323_p8 = por %p322_p7, %p321_p6 }
  0x30   :  { %p324_p9 = pnand %p323_p8, %p317_p5 }
  0x32   :  { %327 = shalt.err (!%p324_p9)
}
  0x33   :  { %44 = dma.hbm_to_vmem [thread:$0]  %s452_s2, 16, %s42_s11, [#allocation6]  }
  0x34   :  { %350 = dma.done.wait [#allocation3], 512  }
  0x35   :  { %351 = vsyncadd [#allocation3], 4294966784 }
  0x36   :  { %352 = dma.done.wait [#allocation6], 1040  }
  0x37   :  { %353 = vsyncadd [#allocation6], 4294966256  ;;  %v58_v0 = vld [vmem:[#allocation5] sm:$0xff]  ;;  %v59_v1 = vld [vmem:[#allocation5 + $0x8] sm:$0xff]  ;;  %vm73_vm0 = vcmask 523264   ;;  %s361_s2 = smov [#allocation8]  }
  0x38   :  { %v60_v2 = vld [vmem:[#allocation5 + $0x10] sm:$0xff]  ;;  %v232_v3 = vpack.c.bf16 %v59_v1, %v58_v0  ;;  %v61_v4 = vld [vmem:[#allocation5 + $0x18] sm:$0xff]  ;;  %v62_v6 = vld [vmem:[#allocation5 + $0x20] sm:$0xff]  ;;  %s180_s22 = sshll.u32 %s361_s2, 4  ;;  %s181_s22 = int_to_ptr.vmem [resolvable:$true] %s180_s22 }
  0x39   :  { %v236_v5 = vpack.c.bf16 %v61_v4, %v60_v2  ;;  %v63_v7 = vld [vmem:[#allocation5 + $0x28] sm:$0xff]  ;;  %v54_v8 = vld [vmem:[#allocation2] sm:$0xff]  ;;  %v56_v9 = vld [vmem:[#allocation2 + $0x10] sm:$0xff]  ;;  %s328_s23 = scalar_lea.vmem %s181_s22, 512  ;;  %p333_p11 = scmp.lt.s32.totalorder %s181_s22, %s181_s22 }
  0x3a   :  { %233 = vmatprep.subr.bf16.mxu0 %v232_v3  ;;  %248 = vmatprep.subr.bf16.mxu1 %v232_v3  ;;  %v240_v10 = vpack.c.bf16 %v63_v7, %v62_v6  ;;  %v64_v11 = vld [vmem:[#allocation5 + $0x30] sm:$0xff]  ;;  %v65_v12 = vld [vmem:[#allocation5 + $0x38] sm:$0xff]  ;;  %v55_v14 = vld [vmem:[#allocation2 + $0x8] sm:$0xff]  ;;  %p329_p10 = scmp.ne.s32.totalorder %s181_s22, %s328_s23  ;;  %p334_p12 = scmp.lt.s32.totalorder %s328_s23, %s328_s23 }
  0x3b   :  { %235 = vmatpush3.bf16.msra.mxu0 %v232_v3  ;;  %252 = vmatpush3.bf16.msra.mxu1 %v232_v3  ;;  %v244_v13 = vpack.c.bf16 %v65_v12, %v64_v11  ;;  %v57_v15 = vld [vmem:[#allocation2 + $0x18] sm:$0xff]  ;;  %v193_v16 = vld [vmem:[#allocation7] ss:$0 sm:$0xff] }
  0x3c   :  { %237 = vmatprep.subr.bf16.mxu0 %v236_v5  ;;  %249 = vmatprep.subr.bf16.mxu1 %v236_v5  ;;  %p335_p13 = por %p334_p12, %p333_p11 }
  0x3d   :  { %226 = vmatprep.mubr.msk.f32.mxu0 %vm73_vm0, %v54_v8  ;;  %229 = vmatprep.mubr.msk.f32.mxu1 %vm73_vm0, %v56_v9 }
  0x3e   :  { %p336_p0 = pnand %p335_p13, %p329_p10 }
  0x3f   :  { %239 = vmatpush3.bf16.msra.mxu0 %v236_v5  ;;  %253 = vmatpush3.bf16.msra.mxu1 %v236_v5 }
  0x40   :  { %241 = vmatprep.subr.bf16.mxu0 %v240_v10  ;;  %250 = vmatprep.subr.bf16.mxu1 %v240_v10 }
  0x43   :  { %243 = vmatpush3.bf16.msra.mxu0 %v240_v10  ;;  %254 = vmatpush3.bf16.msra.mxu1 %v240_v10 }
  0x44   :  { %245 = vmatprep.subr.bf16.mxu0 %v244_v13  ;;  %251 = vmatprep.subr.bf16.mxu1 %v244_v13 }
  0x47   :  { %247 = vmatpush3.bf16.msra.mxu0 %v244_v13  ;;  %255 = vmatpush3.bf16.msra.mxu1 %v244_v13 }
  0x4a   :  { %227 = vmatmul.mubr.msk.f32.vlgmr.msra.gmra.mrb[0].mxu0 %vm73_vm0, %v55_v14  ;;  %230 = vmatmul.mubr.msk.f32.vlgmr.msra.gmra.mrb[0].mxu1 %vm73_vm0, %v57_v15 }
 0x11d   :  { %v228_v17 = vpop.f32.mrb[0].mxu0  ;;  %v231_v18 = vpop.f32.mrb[0].mxu1 }
 0x11e   :  { %v158_v19 = vadd.f32 %v228_v17, %v193_v16  ;;  %v168_v20 = vadd.f32 %v231_v18, %v193_v16  ;;  %v152_v21 = vpop.f32.mrb[1].mxu0  ;;  %v162_v22 = vpop.f32.mrb[1].mxu1 }
 0x11f   :  { %v153_v23 = vadd.f32 %v193_v16, %v152_v21  ;;  %v163_v24 = vadd.f32 %v193_v16, %v162_v22 }
 0x120   :  { %172 = vst [vmem:[#allocation8 + $0x8] sm:$0xff] %v158_v19  ;;  %174 = vst [vmem:[#allocation8 + $0x18] sm:$0xff] %v168_v20 }
 0x121   :  { %171 = vst [vmem:[#allocation8] sm:$0xff] %v153_v23  ;;  %173 = vst [vmem:[#allocation8 + $0x10] sm:$0xff] %v163_v24 }
 0x122   :  { %339 = shalt.err (!%p336_p0)
}
 0x123   :  { %s340_s28 = scalar_lea.hbm %s453_s3, 512 }
 0x124   :  { %p341_p1 = scmp.ne.s32.totalorder %s453_s3, %s340_s28  ;;  %p344_p2 = scmp.lt.u32.totalorder %s340_s28, %s453_s3 }
 0x126   :  { %p346_p3 = pnand %p344_p2, %p341_p1 }
 0x128   :  { %349 = shalt.err (!%p346_p3)
}
 0x129   :  { %186 = dma.vmem_to_hbm [thread:$0]  %s181_s22, 512, %s453_s3, [#allocation4], %s358_s24, %s358_s24, %s359_s25  }
 0x12a   :  { %354 = dma.done.wait [#allocation4], 512  }
 0x12b   :  { %355 = vsyncadd [#allocation4], 4294966784 }
 0x12c   :  { %190 = vsyncpa [#allocation3], 1 }
 0x12d   :  { %191 = vsyncpa [#allocation6], 1 }
 0x12e   :  { %192 = vsyncpa [#allocation4], 1 }

</bundles_post_ra>
